<compile_context>
chip_gen: v7x
topology: tpu7x:2x2x1
jax: 0.10.0
libtpu: 0.0.40
codegen_flags: <defaults>
</compile_context>

<pallas_src>
import numpy as np
import jax
import jax.numpy as jnp
from jax.experimental import pallas as pl
from jax.experimental.pallas import tpu as pltpu

# ------------------------- configuration (module __init__ args) ------------------
SAMPLE_RATE = 8000
WINDOW_SIZE = 256          # n_fft == win_length
HOP_SIZE = 80              # hop in samples
MEL_BINS = 64              # BatchNorm2d(64) forces mel_bins == 64
FMIN = 50.0
FMAX = 4000.0
AMIN = 1e-10
REF = 1.0                  # power_to_db reference (-> additive constant 0)
BN_EPS = 1e-5
NUM_CHANNELS = 1           # self.num_channels

N_FFT = WINDOW_SIZE
N_FREQ = N_FFT // 2        # 128: Nyquist bin dropped (zero mel weight, see build_params)
MEL_PAD = 128              # lane-dense padded mel width (store 128, keep first 64)


def _round_up(a, b):
    return (a + b - 1) // b * b


# ------------------------- parameter construction (plain numpy glue) -------------
def _hann_window_periodic(n):
    # librosa.filters.get_window('hann', n, fftbins=True)
    return 0.5 - 0.5 * np.cos(2.0 * np.pi * np.arange(n) / n)


def _hz_to_mel(f):
    # Slaney mel scale (librosa default, htk=False)
    f = np.asarray(f, dtype=np.float64)
    f_sp = 200.0 / 3
    mels = f / f_sp
    min_log_hz = 1000.0
    min_log_mel = min_log_hz / f_sp
    logstep = np.log(6.4) / 27.0
    log_t = f >= min_log_hz
    mels = np.where(log_t, min_log_mel + np.log(np.maximum(f, 1e-12) / min_log_hz) / logstep, mels)
    return mels


def _mel_to_hz(m):
    m = np.asarray(m, dtype=np.float64)
    f_sp = 200.0 / 3
    freqs = m * f_sp
    min_log_hz = 1000.0
    min_log_mel = min_log_hz / f_sp
    logstep = np.log(6.4) / 27.0
    log_t = m >= min_log_mel
    freqs = np.where(log_t, min_log_hz * np.exp(logstep * (m - min_log_mel)), freqs)
    return freqs


def _mel_filterbank(sr, n_fft, n_mels, fmin, fmax):
    # librosa.filters.mel(sr, n_fft, n_mels, fmin, fmax), norm='slaney', htk=False
    n_freq = n_fft // 2 + 1
    fftfreqs = np.linspace(0.0, sr / 2.0, n_freq)
    mel_pts = _mel_to_hz(np.linspace(_hz_to_mel(fmin), _hz_to_mel(fmax), n_mels + 2))
    fdiff = np.diff(mel_pts)
    ramps = mel_pts[:, None] - fftfreqs[None, :]
    weights = np.zeros((n_mels, n_freq), dtype=np.float64)
    for i in range(n_mels):
        lower = -ramps[i] / fdiff[i]
        upper = ramps[i + 2] / fdiff[i + 1]
        weights[i] = np.maximum(0.0, np.minimum(lower, upper))
    enorm = 2.0 / (mel_pts[2:n_mels + 2] - mel_pts[:n_mels])
    weights *= enorm[:, None]
    return weights  # (n_mels, n_freq)


def build_params():
    n_freq_full = N_FFT // 2 + 1
    win = _hann_window_periodic(N_FFT)                        # (256,)
    n = np.arange(N_FFT)
    k = np.arange(n_freq_full)
    ang = 2.0 * np.pi * np.outer(n, k) / N_FFT                # (256, 129)
    cos_k = np.cos(ang) * win[:, None]
    sin_k = np.sin(ang) * win[:, None]

    mel_full = _mel_filterbank(SAMPLE_RATE, N_FFT, MEL_BINS, FMIN, FMAX)   # (64, 129)
    # Dropping the Nyquist bin is (numerically) exact here only because fmax == sr/2 makes
    # its mel filter weights ~0 (< 1e-14 relative); assert so a future fmax change breaks loudly.
    assert np.max(np.abs(mel_full[:, -1])) < 1e-8 * np.max(mel_full), (
        "Nyquist mel weights are non-zero; cannot drop the Nyquist bin.")

    # Fused windowed-DFT matrix [cos | sin]: one MXU-perfect (256, 256) matmul per tile.
    dft_k = np.concatenate([cos_k[:, :N_FREQ], sin_k[:, :N_FREQ]], axis=1).astype(np.float32)

    # Mel projection with Nyquist dropped, zero-padded to 128 output lanes (lane-dense stores).
    mel_w = np.zeros((N_FREQ, MEL_PAD), dtype=np.float32)
    mel_w[:, :MEL_BINS] = mel_full[:, :N_FREQ].T

    # BatchNorm2d(64) deterministic init, eval-mode, fused into per-mel-bin scale/bias;
    # the power_to_db constant 10/ln(10) is folded into the scale (ref=1 -> no extra offset).
    gamma = np.ones(MEL_BINS, dtype=np.float64)
    beta = np.zeros(MEL_BINS, dtype=np.float64)
    running_mean = np.zeros(MEL_BINS, dtype=np.float64)
    running_var = np.ones(MEL_BINS, dtype=np.float64)
    bn_scale = gamma / np.sqrt(running_var + BN_EPS)
    bn_bias = beta - running_mean * bn_scale
    db_const = 10.0 / np.log(10.0)

    scale = np.full((1, MEL_PAD), db_const, dtype=np.float32)
    bias = np.zeros((1, MEL_PAD), dtype=np.float32)
    scale[0, :MEL_BINS] = (bn_scale * db_const).astype(np.float32)
    bias[0, :MEL_BINS] = bn_bias.astype(np.float32)

    return dict(
        dft_k=jnp.asarray(dft_k),     # (256, 256)
        mel_w=jnp.asarray(mel_w),     # (128, 128)
        scale=jnp.asarray(scale),     # (1, 128)
        bias=jnp.asarray(bias),       # (1, 128)
    )


# ------------------------- Pallas kernel (hot path) -------------------------------
def feat_kernel(frames_ref, dftk_ref, melw_ref, scale_ref, bias_ref, out_ref):
    # Single fused DFT matmul: (TILE_M, 256) x (256, 256) -> [re | im]
    spec = jnp.dot(frames_ref[...], dftk_ref[...], preferred_element_type=jnp.float32)
    re = spec[:, :N_FREQ]
    im = spec[:, N_FREQ:]
    power = re * re + im * im                                             # (TILE_M, 128)
    # Mel projection (output padded to 128 lanes -> unmasked lane-dense stores)
    mel = jnp.dot(power, melw_ref[...], preferred_element_type=jnp.float32)
    # power_to_db (ref=1, top_db=None) + eval-mode BatchNorm2d, pre-fused:
    #   scale = 10/ln(10) * gamma/sqrt(var+eps),  bias = beta - mean*scale_bn
    out_ref[...] = jnp.log(jnp.maximum(mel, AMIN)) * scale_ref[...] + bias_ref[...]


def feature_extraction_layer(x, params, tile_m=1024):
    """x: (B, 1, L) float32 waveform. Returns (B, 1, T, MEL_BINS)."""
    B = x.shape[0]
    x = x[:, 0, :].astype(jnp.float32)                       # squeeze(1) -> (B, L)
    pad = N_FFT // 2
    xp = jnp.pad(x, ((0, 0), (pad, pad)), mode="reflect")    # center=True, pad_mode='reflect'
    T = (xp.shape[1] - N_FFT) // HOP_SIZE + 1
    idx = jnp.arange(T)[:, None] * HOP_SIZE + jnp.arange(N_FFT)[None, :]   # (T, n_fft)
    frames = xp[:, idx].reshape(B * T, N_FFT)                 # framing glue
    # TODO(synk): framing is done in the wrapper (materializes ~3.2x the waveform in HBM);
    # an in-kernel strided framing path (memory_space=pl.ANY + manual DMA) would cut that.

    M = B * T
    TILE_M = min(tile_m, _round_up(M, 8))                     # sublane-aligned row tile
    M_pad = _round_up(M, TILE_M)
    if M_pad != M:
        frames = jnp.pad(frames, ((0, M_pad - M), (0, 0)))

    grid = (M_pad // TILE_M,)
    flops = 2 * M_pad * N_FFT * (2 * N_FREQ) + 2 * M_pad * N_FREQ * MEL_PAD
    bytes_accessed = 4 * (M_pad * N_FFT + N_FFT * 2 * N_FREQ + N_FREQ * MEL_PAD
                          + 2 * MEL_PAD + M_pad * MEL_PAD)

    out = pl.pallas_call(
        feat_kernel,
        out_shape=jax.ShapeDtypeStruct((M_pad, MEL_PAD), jnp.float32),
        grid_spec=pltpu.PrefetchScalarGridSpec(
            num_scalar_prefetch=0,
            grid=grid,
            in_specs=[
                pl.BlockSpec((TILE_M, N_FFT), lambda i: (i, 0)),       # frames: streamed
                pl.BlockSpec((N_FFT, 2 * N_FREQ), lambda i: (0, 0)),   # DFT matrix: resident
                pl.BlockSpec((N_FREQ, MEL_PAD), lambda i: (0, 0)),     # mel weights: resident
                pl.BlockSpec((1, MEL_PAD), lambda i: (0, 0)),          # fused BN scale
                pl.BlockSpec((1, MEL_PAD), lambda i: (0, 0)),          # fused BN bias
            ],
            out_specs=pl.BlockSpec((TILE_M, MEL_PAD), lambda i: (i, 0)),
        ),
        compiler_params=pltpu.CompilerParams(
            dimension_semantics=("parallel",),       # megacore sharding of the row grid
            vmem_limit_bytes=32 * 1024 * 1024,       # tiles use ~5 MiB; safe on v5e/v6e/v7x
        ),
        cost_estimate=pl.CostEstimate(
            flops=flops,
            transcendentals=M_pad * MEL_PAD,
            bytes_accessed=bytes_accessed,
        ),
    )(frames, params["dft_k"], params["mel_w"], params["scale"], params["bias"])

    out = out[:M, :MEL_BINS].reshape(B, T, MEL_BINS)[:, None, :, :]   # (B, 1, T, mel_bins)
    # x.repeat(1, num_channels=1, 1, 1) is the identity
    out = jnp.tile(out, (1, NUM_CHANNELS, 1, 1))
    return out


# ------------------------- driver --------------------------------------------------
if __name__ == "__main__":
    key = jax.random.PRNGKey(0)
    B, L = 2, 800                                   # small waveform, 0.1 s @ 8 kHz
    x = jax.random.normal(key, (B, 1, L), dtype=jnp.float32)

    params = build_params()
    y = feature_extraction_layer(x, params)
    y = jax.block_until_ready(y)

    expected_T = (L + 2 * (WINDOW_SIZE // 2) - WINDOW_SIZE) // HOP_SIZE + 1
    assert y.shape == (B, NUM_CHANNELS, expected_T, MEL_BINS), y.shape
    assert bool(jnp.all(jnp.isfinite(y)))
    print("KERNEL_OK")
</pallas_src>

<mosaic_0001>
module attributes {stable_mosaic.version = 11 : i64} {
  func.func @feat_kernel(%arg0: i32, %arg1: memref<24x256xf32, #tpu.memory_space<vmem>>, %arg2: memref<256x256xf32, #tpu.memory_space<vmem>>, %arg3: memref<128x128xf32, #tpu.memory_space<vmem>>, %arg4: memref<1x128xf32, #tpu.memory_space<vmem>>, %arg5: memref<1x128xf32, #tpu.memory_space<vmem>>, %arg6: memref<24x128xf32, #tpu.memory_space<vmem>>) attributes {dimension_semantics = [#tpu.dimension_semantics<parallel>], iteration_bounds = array<i64: 1>, scalar_prefetch = 0 : i64, scratch_operands = 0 : i64, tpu.core_type = #tpu.core_type<tc>, window_params = [{transform_indices = @transform_0, window_bounds = array<i64: 24, 256>}, {pipeline_mode = #tpu.pipeline_mode<synchronous>, transform_indices = @transform_1, window_bounds = array<i64: 256, 256>}, {pipeline_mode = #tpu.pipeline_mode<synchronous>, transform_indices = @transform_2, window_bounds = array<i64: 128, 128>}, {pipeline_mode = #tpu.pipeline_mode<synchronous>, transform_indices = @transform_3, window_bounds = array<i64: 1, 128>}, {pipeline_mode = #tpu.pipeline_mode<synchronous>, transform_indices = @transform_4, window_bounds = array<i64: 1, 128>}, {transform_indices = @transform_5, window_bounds = array<i64: 24, 128>}]} {
    %c0 = arith.constant 0 : index
    %c0_0 = arith.constant 0 : index
    %0 = vector.load %arg1[%c0, %c0_0] : memref<24x256xf32, #tpu.memory_space<vmem>>, vector<24x256xf32>
    %c0_1 = arith.constant 0 : index
    %c0_2 = arith.constant 0 : index
    %1 = vector.load %arg2[%c0_1, %c0_2] : memref<256x256xf32, #tpu.memory_space<vmem>>, vector<256x256xf32>
    %cst = arith.constant dense<0.000000e+00> : vector<24x256xf32>
    %2 = tpu.matmul %0, %1, %cst {dimension_numbers = #tpu.dot_dimension_numbers<[1], [0], [0], [1], [0, 0, 1, 1], [], []>} : vector<24x256xf32>, vector<256x256xf32>, vector<24x256xf32> -> vector<24x256xf32>
    %3 = vector.extract_strided_slice %2 {offsets = [0, 0], sizes = [24, 128], strides = [1, 1]} : vector<24x256xf32> to vector<24x128xf32>
    %4 = vector.extract_strided_slice %2 {offsets = [0, 128], sizes = [24, 128], strides = [1, 1]} : vector<24x256xf32> to vector<24x128xf32>
    %5 = arith.mulf %3, %3 : vector<24x128xf32>
    %6 = arith.mulf %4, %4 : vector<24x128xf32>
    %7 = arith.addf %5, %6 : vector<24x128xf32>
    %c0_3 = arith.constant 0 : index
    %c0_4 = arith.constant 0 : index
    %8 = vector.load %arg3[%c0_3, %c0_4] : memref<128x128xf32, #tpu.memory_space<vmem>>, vector<128x128xf32>
    %cst_5 = arith.constant dense<0.000000e+00> : vector<24x128xf32>
    %9 = tpu.matmul %7, %8, %cst_5 {dimension_numbers = #tpu.dot_dimension_numbers<[1], [0], [0], [1], [0, 0, 1, 1], [], []>} : vector<24x128xf32>, vector<128x128xf32>, vector<24x128xf32> -> vector<24x128xf32>
    %cst_6 = arith.constant 1.000000e-10 : f32
    %10 = vector.broadcast %cst_6 : f32 to vector<24x128xf32>
    %11 = arith.maximumf %9, %10 : vector<24x128xf32>
    %12 = math.log %11 : vector<24x128xf32>
    %c0_7 = arith.constant 0 : index
    %c0_8 = arith.constant 0 : index
    %13 = vector.load %arg4[%c0_7, %c0_8] : memref<1x128xf32, #tpu.memory_space<vmem>>, vector<1x128xf32>
    %14 = vector.broadcast %13 : vector<1x128xf32> to vector<24x128xf32>
    %15 = arith.mulf %12, %14 : vector<24x128xf32>
    %c0_9 = arith.constant 0 : index
    %c0_10 = arith.constant 0 : index
    %16 = vector.load %arg5[%c0_9, %c0_10] : memref<1x128xf32, #tpu.memory_space<vmem>>, vector<1x128xf32>
    %17 = vector.broadcast %16 : vector<1x128xf32> to vector<24x128xf32>
    %18 = arith.addf %15, %17 : vector<24x128xf32>
    %c0_11 = arith.constant 0 : index
    %c0_12 = arith.constant 0 : index
    %19 = vector.load %arg6[%c0_11, %c0_12] : memref<24x128xf32, #tpu.memory_space<vmem>>, vector<24x128xf32>
    tpu.vector_store %arg6[%c0_11, %c0_12], %18 {strides = array<i32>} : memref<24x128xf32, #tpu.memory_space<vmem>>, vector<24x128xf32>,
    return
  }
  func.func @transform_0(%arg0: i32) -> (i32, i32) {
    %c0_i32 = arith.constant 0 : i32
    %c0_i32_0 = arith.constant 0 : i32
    return %arg0, %c0_i32 : i32, i32
  }
  func.func @transform_1(%arg0: i32) -> (i32, i32) {
    %c0_i32 = arith.constant 0 : i32
    %c0_i32_0 = arith.constant 0 : i32
    %c0_i32_1 = arith.constant 0 : i32
    return %c0_i32, %c0_i32_0 : i32, i32
  }
  func.func @transform_2(%arg0: i32) -> (i32, i32) {
    %c0_i32 = arith.constant 0 : i32
    %c0_i32_0 = arith.constant 0 : i32
    %c0_i32_1 = arith.constant 0 : i32
    return %c0_i32, %c0_i32_0 : i32, i32
  }
  func.func @transform_3(%arg0: i32) -> (i32, i32) {
    %c0_i32 = arith.constant 0 : i32
    %c0_i32_0 = arith.constant 0 : i32
    %c0_i32_1 = arith.constant 0 : i32
    return %c0_i32, %c0_i32_0 : i32, i32
  }
  func.func @transform_4(%arg0: i32) -> (i32, i32) {
    %c0_i32 = arith.constant 0 : i32
    %c0_i32_0 = arith.constant 0 : i32
    %c0_i32_1 = arith.constant 0 : i32
    return %c0_i32, %c0_i32_0 : i32, i32
  }
  func.func @transform_5(%arg0: i32) -> (i32, i32) {
    %c0_i32 = arith.constant 0 : i32
    %c0_i32_0 = arith.constant 0 : i32
    return %arg0, %c0_i32 : i32, i32
  }
}

</mosaic_0001>

<bundles_post_ra>
// kernel: tpu_custom_call.1
= control target key start
LH: loop header
LB: loop body
LE: loop exit
PB: predicated region body
PF: predicated region fallthrough
CT: control target
= control target key end

     0   :  { %10 = vsyncpa [#allocation3], 0  ;;  %s750_s0 = inlined_call_operand.hbm [shape: f32[24,256], index: 0, kind: input, shape index: {}]   ;;  %s751_s1 = inlined_call_operand.hbm [shape: f32[256,256], index: 1, kind: input, shape index: {}]   ;;  %s752_s2 = inlined_call_operand.hbm [shape: f32[128,128], index: 2, kind: input, shape index: {}]   ;;  %s753_s3 = inlined_call_operand.vmem [shape: f32[1,128], index: 3, kind: input, shape index: {}]   ;;  %s754_s4 = inlined_call_operand.vmem [shape: f32[1,128], index: 4, kind: input, shape index: {}]   ;;  %s755_s5 = inlined_call_operand.hbm [shape: f32[24,128], index: 5, kind: output, shape index: {}]  }
   0x1   :  { %11 = vsyncpa [#allocation6], 0 }
   0x2   :  { %12 = vsyncpa [#allocation4], 0  ;;  %s631_s18 = smov [#allocation5]   ;;  %s632_s20 = smov [#allocation2]  }
   0x3   :  { %s30_s19 = sshll.u32 %s631_s18, 4  ;;  %s18_s21 = sshll.u32 %s632_s20, 4  ;;  %s31_s19 = int_to_ptr.vmem [resolvable:$true] %s30_s19  ;;  %s672_s21 = int_to_ptr.vmem [resolvable:$true] %s18_s21 }
   0x4   :  { %s537_s24 = scalar_lea.hbm %s751_s1, 8192 }
   0x5   :  { %p538_p0 = scmp.ne.s32.totalorder %s751_s1, %s537_s24  ;;  %p541_p1 = scmp.lt.u32.totalorder %s537_s24, %s751_s1 }
   0x7   :  { %p543_p2 = pnand %p541_p1, %p538_p0 }
   0x9   :  { %546 = shalt.err (!%p543_p2)
}
   0xa   :  { %s547_s29 = scalar_lea.vmem %s31_s19, 8192  ;;  %p552_p4 = scmp.lt.s32.totalorder %s31_s19, %s31_s19 }
   0xb   :  { %p548_p3 = scmp.ne.s32.totalorder %s31_s19, %s547_s29  ;;  %p553_p5 = scmp.lt.s32.totalorder %s547_s29, %s547_s29 }
   0xd   :  { %p554_p6 = por %p553_p5, %p552_p4 }
   0xf   :  { %p555_p7 = pnand %p554_p6, %p548_p3 }
  0x11   :  { %558 = shalt.err (!%p555_p7)
}
  0x12   :  { %s633_s30 = smov 256   ;;  %s634_s6 = smov 16  }
  0x13   :  { %36 = dma.hbm_to_vmem [thread:$0]  %s751_s1, 8192, %s31_s19, [#allocation6], %s633_s30, %s633_s30, %s634_s6  }
  0x14   :  { %s559_s11 = scalar_lea.hbm %s750_s0, 768 }
  0x15   :  { %p560_p8 = scmp.ne.s32.totalorder %s750_s0, %s559_s11  ;;  %p563_p9 = scmp.lt.u32.totalorder %s559_s11, %s750_s0 }
  0x17   :  { %p565_p10 = pnand %p563_p9, %p560_p8 }
  0x19   :  { %568 = shalt.err (!%p565_p10)
}
  0x1a   :  { %s569_s16 = scalar_lea.vmem %s672_s21, 768  ;;  %p574_p12 = scmp.lt.s32.totalorder %s672_s21, %s672_s21 }
  0x1b   :  { %p570_p11 = scmp.ne.s32.totalorder %s672_s21, %s569_s16  ;;  %p575_p13 = scmp.lt.s32.totalorder %s569_s16, %s569_s16 }
  0x1d   :  { %p576_p0 = por %p575_p13, %p574_p12 }
  0x1f   :  { %p577_p1 = pnand %p576_p0, %p570_p11 }
  0x21   :  { %580 = shalt.err (!%p577_p1)
}
  0x22   :  { %24 = dma.hbm_to_vmem [thread:$0]  %s750_s0, 768, %s672_s21, [#allocation3], %s633_s30, %s633_s30, %s634_s6  }
  0x23   :  { %s635_s18 = smov [#allocation7]   ;;  %s581_s23 = scalar_lea.hbm %s752_s2, 2048 }
  0x24   :  { %s42_s19 = sshll.u32 %s635_s18, 4  ;;  %p582_p2 = scmp.ne.s32.totalorder %s752_s2, %s581_s23  ;;  %s43_s19 = int_to_ptr.vmem [resolvable:$true] %s42_s19 }
  0x25   :  { %p585_p3 = scmp.lt.u32.totalorder %s581_s23, %s752_s2 }
  0x27   :  { %p587_p4 = pnand %p585_p3, %p582_p2 }
  0x29   :  { %590 = shalt.err (!%p587_p4)
}
  0x2a   :  { %s591_s28 = scalar_lea.vmem %s43_s19, 2048  ;;  %p596_p6 = scmp.lt.s32.totalorder %s43_s19, %s43_s19 }
  0x2b   :  { %p592_p5 = scmp.ne.s32.totalorder %s43_s19, %s591_s28  ;;  %p597_p7 = scmp.lt.s32.totalorder %s591_s28, %s591_s28 }
  0x2d   :  { %p598_p8 = por %p597_p7, %p596_p6 }
  0x2f   :  { %p599_p9 = pnand %p598_p8, %p592_p5 }
  0x31   :  { %602 = shalt.err (!%p599_p9)
}
  0x32   :  { %s636_s0 = smov 128   ;;  %s637_s21 = smov 8  }
  0x33   :  { %48 = dma.hbm_to_vmem [thread:$0]  %s752_s2, 2048, %s43_s19, [#allocation6], %s636_s0, %s636_s0, %s637_s21  }
  0x34   :  { %625 = dma.done.wait [#allocation3], 768  }
  0x35   :  { %626 = vsyncadd [#allocation3], 4294966528 }
  0x36   :  { %627 = dma.done.wait [#allocation6], 10240  }
  0x37   :  { %628 = vsyncadd [#allocation6], 4294957056  ;;  %v638_v0 = vmov 0.0|0.0   ;;  %v69_v1 = vld [vmem:[#allocation5 + $0x8] sm:$0xff]  ;;  %v71_v2 = vld [vmem:[#allocation5 + $0x18] sm:$0xff]  ;;  %vm639_vm0 = vmmov 0  }
  0x38   :  { %496 = vmatprep.subr.bf16.mxu1 %v638_v0  ;;  %v68_v3 = vld [vmem:[#allocation5] sm:$0xff]  ;;  %v432_v4 = vpack.c.bf16 %v71_v2, %v69_v1  ;;  %v70_v5 = vld [vmem:[#allocation5 + $0x10] sm:$0xff]  ;;  %v73_v6 = vld [vmem:[#allocation5 + $0x28] sm:$0xff]  ;;  %s641_s9 = smov [#allocation8]  }
  0x39   :  { %v75_v7 = vld [vmem:[#allocation5 + $0x38] sm:$0xff]  ;;  %v434_v8 = vpack.c.bf16 %v70_v5, %v68_v3  ;;  %v72_v10 = vld [vmem:[#allocation5 + $0x20] sm:$0xff]  ;;  %v74_v11 = vld [vmem:[#allocation5 + $0x30] sm:$0xff]  ;;  %s357_s10 = sshll.u32 %s641_s9, 4  ;;  %s358_s10 = int_to_ptr.vmem [resolvable:$true] %s357_s10 }
  0x3a   :  { %v436_v9 = vpack.c.bf16 %v75_v7, %v73_v6  ;;  %v77_v12 = vld [vmem:[#allocation5 + $0x48] sm:$0xff]  ;;  %433 = vmatprep.subr.bf16.mxu0 %v432_v4  ;;  %v79_v13 = vld [vmem:[#allocation5 + $0x58] sm:$0xff]  ;;  %v438_v14 = vpack.c.bf16 %v74_v11, %v72_v10  ;;  %v76_v16 = vld [vmem:[#allocation5 + $0x40] sm:$0xff]  ;;  %p608_p11 = scmp.lt.s32.totalorder %s358_s10, %s358_s10 }
  0x3b   :  { %435 = vmatpush1.bf16.msra.mxu0 %v434_v8  ;;  %v440_v15 = vpack.c.bf16 %v79_v13, %v77_v12  ;;  %v78_v17 = vld [vmem:[#allocation5 + $0x50] sm:$0xff]  ;;  %v81_v18 = vld [vmem:[#allocation5 + $0x68] sm:$0xff]  ;;  %v83_v19 = vld [vmem:[#allocation5 + $0x78] sm:$0xff] }
  0x3c   :  { %437 = vmatprep.subr.bf16.mxu0 %v436_v9  ;;  %v442_v20 = vpack.c.bf16 %v78_v17, %v76_v16  ;;  %v444_v21 = vpack.c.bf16 %v83_v19, %v81_v18  ;;  %v80_v22 = vld [vmem:[#allocation5 + $0x60] sm:$0xff]  ;;  %v82_v23 = vld [vmem:[#allocation5 + $0x70] sm:$0xff]  ;;  %v85_v24 = vld [vmem:[#allocation5 + $0x88] sm:$0xff] }
  0x3d   :  { %v87_v25 = vld [vmem:[#allocation5 + $0x98] sm:$0xff]  ;;  %v446_v26 = vpack.c.bf16 %v82_v23, %v80_v22  ;;  %v84_v28 = vld [vmem:[#allocation5 + $0x80] sm:$0xff]  ;;  %v86_v29 = vld [vmem:[#allocation5 + $0x90] sm:$0xff] }
  0x3e   :  { %v448_v27 = vpack.c.bf16 %v87_v25, %v85_v24  ;;  %v89_v30 = vld [vmem:[#allocation5 + $0xa8] sm:$0xff]  ;;  %v91_v31 = vld [vmem:[#allocation5 + $0xb8] sm:$0xff]  ;;  %v450_v32 = vpack.c.bf16 %v86_v29, %v84_v28  ;;  %v88_v34 = vld [vmem:[#allocation5 + $0xa0] sm:$0xff] }
  0x3f   :  { %439 = vmatpush1.bf16.msra.mxu0 %v438_v14  ;;  %v452_v33 = vpack.c.bf16 %v91_v31, %v89_v30  ;;  %v90_v35 = vld [vmem:[#allocation5 + $0xb0] sm:$0xff]  ;;  %v93_v36 = vld [vmem:[#allocation5 + $0xc8] sm:$0xff]  ;;  %v95_v37 = vld [vmem:[#allocation5 + $0xd8] sm:$0xff] }
  0x40   :  { %441 = vmatprep.subr.bf16.mxu0 %v440_v15  ;;  %v454_v38 = vpack.c.bf16 %v90_v35, %v88_v34  ;;  %v456_v39 = vpack.c.bf16 %v95_v37, %v93_v36  ;;  %v92_v40 = vld [vmem:[#allocation5 + $0xc0] sm:$0xff]  ;;  %v94_v41 = vld [vmem:[#allocation5 + $0xd0] sm:$0xff]  ;;  %v63_v42 = vld [vmem:[#allocation2 + $0x8] sm:$0xff] }
  0x41   :  { %v97_v43 = vld [vmem:[#allocation5 + $0xe8] sm:$0xff]  ;;  %v99_v44 = vld [vmem:[#allocation5 + $0xf8] sm:$0xff]  ;;  %196 = vmatprep.mubr.f32.mxu0 %v63_v42  ;;  %v224_v45 = vld [vmem:[#allocation7] sm:$0xff]  ;;  %v458_v47 = vpack.c.bf16 %v94_v41, %v92_v40 }
  0x42   :  { %v225_v46 = vld [vmem:[#allocation7 + $0x8] sm:$0xff]  ;;  %v226_v49 = vld [vmem:[#allocation7 + $0x10] sm:$0xff]  ;;  %v227_v50 = vld [vmem:[#allocation7 + $0x18] sm:$0xff]  ;;  %v460_v51 = vpack.c.bf16 %v99_v44, %v97_v43 }
  0x43   :  { %443 = vmatpush1.bf16.msra.mxu0 %v442_v20  ;;  %v497_v48 = vpack.c.bf16 %v225_v46, %v224_v45  ;;  %v96_v52 = vld [vmem:[#allocation5 + $0xe0] sm:$0xff]  ;;  %v98_v53 = vld [vmem:[#allocation5 + $0xf0] sm:$0xff]  ;;  %v101_v54 = vld [vmem:[#allocation5 + $0x108] sm:$0xff]  ;;  %v500_v56 = vpack.c.bf16 %v227_v50, %v226_v49 }
  0x44   :  { %445 = vmatprep.subr.bf16.mxu0 %v444_v21  ;;  %v103_v55 = vld [vmem:[#allocation5 + $0x118] sm:$0xff]  ;;  %v228_v57 = vld [vmem:[#allocation7 + $0x20] sm:$0xff]  ;;  %v229_v58 = vld [vmem:[#allocation7 + $0x28] sm:$0xff]  ;;  %v462_v59 = vpack.c.bf16 %v98_v53, %v96_v52 }
  0x45   :  { %498 = vmatpush3.bf16.msra.mxu1 %v497_v48  ;;  %v464_v60 = vpack.c.bf16 %v103_v55, %v101_v54  ;;  %v100_v61 = vld [vmem:[#allocation5 + $0x100] sm:$0xff]  ;;  %v102_v62 = vld [vmem:[#allocation5 + $0x110] sm:$0xff]  ;;  %v105_v63 = vld [vmem:[#allocation5 + $0x128] sm:$0xff]  ;;  %v503_v2 = vpack.c.bf16 %v229_v58, %v228_v57 }
  0x46   :  { %499 = vmatprep.subr.bf16.mxu1 %v638_v0  ;;  %v107_v1 = vld [vmem:[#allocation5 + $0x138] sm:$0xff]  ;;  %v230_v3 = vld [vmem:[#allocation7 + $0x30] sm:$0xff]  ;;  %v466_v5 = vpack.c.bf16 %v102_v62, %v100_v61  ;;  %v104_v7 = vld [vmem:[#allocation5 + $0x120] sm:$0xff] }
  0x47   :  { %447 = vmatpush1.bf16.msra.mxu0 %v446_v26  ;;  %v231_v4 = vld [vmem:[#allocation7 + $0x38] sm:$0xff]  ;;  %v468_v6 = vpack.c.bf16 %v107_v1, %v105_v63  ;;  %v106_v8 = vld [vmem:[#allocation5 + $0x130] sm:$0xff]  ;;  %v109_v9 = vld [vmem:[#allocation5 + $0x148] sm:$0xff]  ;;  %v640_v63 = vmov 0.0  }
  0x48   :  { %449 = vmatprep.subr.bf16.mxu0 %v448_v27  ;;  %v111_v10 = vld [vmem:[#allocation5 + $0x158] sm:$0xff]  ;;  %v506_v11 = vpack.c.bf16 %v231_v4, %v230_v3  ;;  %v232_v12 = vld [vmem:[#allocation7 + $0x40] sm:$0xff]  ;;  %v233_v13 = vld [vmem:[#allocation7 + $0x48] sm:$0xff]  ;;  %v470_v14 = vpack.c.bf16 %v106_v8, %v104_v7  ;;  %423 = vmatprep.mubr.msk.f32.mxu1 %vm639_vm0, %v640_v63 }
  0x49   :  { %501 = vmatpush3.bf16.msra.mxu1 %v500_v56  ;;  %v472_v15 = vpack.c.bf16 %v111_v10, %v109_v9  ;;  %v108_v16 = vld [vmem:[#allocation5 + $0x140] sm:$0xff]  ;;  %v110_v17 = vld [vmem:[#allocation5 + $0x150] sm:$0xff]  ;;  %v113_v18 = vld [vmem:[#allocation5 + $0x168] sm:$0xff]  ;;  %v509_v20 = vpack.c.bf16 %v233_v13, %v232_v12 }
  0x4a   :  { %502 = vmatprep.subr.bf16.mxu1 %v638_v0  ;;  %v115_v19 = vld [vmem:[#allocation5 + $0x178] sm:$0xff]  ;;  %v234_v21 = vld [vmem:[#allocation7 + $0x50] sm:$0xff]  ;;  %v474_v23 = vpack.c.bf16 %v110_v17, %v108_v16  ;;  %v112_v25 = vld [vmem:[#allocation5 + $0x160] sm:$0xff] }
  0x4b   :  { %451 = vmatpush1.bf16.msra.mxu0 %v450_v32  ;;  %v235_v22 = vld [vmem:[#allocation7 + $0x58] sm:$0xff]  ;;  %v476_v24 = vpack.c.bf16 %v115_v19, %v113_v18  ;;  %v114_v26 = vld [vmem:[#allocation5 + $0x170] sm:$0xff]  ;;  %v117_v27 = vld [vmem:[#allocation5 + $0x188] sm:$0xff] }
  0x4c   :  { %453 = vmatprep.subr.bf16.mxu0 %v452_v33  ;;  %v119_v28 = vld [vmem:[#allocation5 + $0x198] sm:$0xff]  ;;  %v512_v29 = vpack.c.bf16 %v235_v22, %v234_v21  ;;  %v236_v30 = vld [vmem:[#allocation7 + $0x60] sm:$0xff]  ;;  %v237_v31 = vld [vmem:[#allocation7 + $0x68] sm:$0xff]  ;;  %v478_v32 = vpack.c.bf16 %v114_v26, %v112_v25 }
  0x4d   :  { %504 = vmatpush3.bf16.msra.mxu1 %v503_v2  ;;  %v480_v33 = vpack.c.bf16 %v119_v28, %v117_v27  ;;  %v116_v34 = vld [vmem:[#allocation5 + $0x180] sm:$0xff]  ;;  %v118_v35 = vld [vmem:[#allocation5 + $0x190] sm:$0xff]  ;;  %v121_v36 = vld [vmem:[#allocation5 + $0x1a8] sm:$0xff] }
  0x4e   :  { %505 = vmatprep.subr.bf16.mxu1 %v638_v0  ;;  %v123_v37 = vld [vmem:[#allocation5 + $0x1b8] sm:$0xff]  ;;  %v120_v41 = vld [vmem:[#allocation5 + $0x1a0] sm:$0xff]  ;;  %v122_v42 = vld [vmem:[#allocation5 + $0x1b0] sm:$0xff] }
  0x4f   :  { %455 = vmatpush1.bf16.msra.mxu0 %v454_v38  ;;  %v515_v38 = vpack.c.bf16 %v237_v31, %v236_v30  ;;  %v484_v40 = vpack.c.bf16 %v123_v37, %v121_v36  ;;  %v125_v43 = vld [vmem:[#allocation5 + $0x1c8] sm:$0xff]  ;;  %v127_v44 = vld [vmem:[#allocation5 + $0x1d8] sm:$0xff]  ;;  %v486_v45 = vpack.c.bf16 %v122_v42, %v120_v41  ;;  %v126_v48 = vld [vmem:[#allocation5 + $0x1d0] sm:$0xff] }
  0x50   :  { %457 = vmatprep.subr.bf16.mxu0 %v456_v39  ;;  %v482_v39 = vpack.c.bf16 %v118_v35, %v116_v34  ;;  %v488_v46 = vpack.c.bf16 %v127_v44, %v125_v43  ;;  %v129_v49 = vld [vmem:[#allocation5 + $0x1e8] sm:$0xff]  ;;  %v131_v50 = vld [vmem:[#allocation5 + $0x1f8] sm:$0xff]  ;;  %v128_v53 = vld [vmem:[#allocation5 + $0x1e0] sm:$0xff] }
  0x51   :  { %507 = vmatpush3.bf16.msra.mxu1 %v506_v11  ;;  %v492_v52 = vpack.c.bf16 %v131_v50, %v129_v49  ;;  %v130_v54 = vld [vmem:[#allocation5 + $0x1f0] sm:$0xff]  ;;  %v64_v57 = vld [vmem:[#allocation2 + $0x10] sm:$0xff]  ;;  %v67_v58 = vld [vmem:[#allocation2 + $0x28] sm:$0xff] }
  0x52   :  { %508 = vmatprep.subr.bf16.mxu1 %v638_v0  ;;  %v494_v55 = vpack.c.bf16 %v130_v54, %v128_v53  ;;  %v62_v56 = vld [vmem:[#allocation2] sm:$0xff]  ;;  %v239_v61 = vld [vmem:[#allocation7 + $0x78] sm:$0xff] }
  0x53   :  { %459 = vmatpush1.bf16.msra.mxu0 %v458_v47  ;;  %v124_v47 = vld [vmem:[#allocation5 + $0x1c0] sm:$0xff]  ;;  %v370_v26 = vld [vmem:[%s753_s3] ss:$0 sm:$0xff]  ;;  %s603_s3 = scalar_lea.vmem %s358_s10, 384 }
  0x54   :  { %461 = vmatprep.subr.bf16.mxu0 %v460_v51  ;;  %v490_v51 = vpack.c.bf16 %v126_v48, %v124_v47  ;;  %v371_v28 = vld [vmem:[%s754_s4] ss:$0 sm:$0xff]  ;;  %p604_p10 = scmp.ne.s32.totalorder %s358_s10, %s603_s3  ;;  %p609_p12 = scmp.lt.s32.totalorder %s603_s3, %s603_s3 }
  0x55   :  { %510 = vmatpush3.bf16.msra.mxu1 %v509_v20 }
  0x56   :  { %511 = vmatprep.subr.bf16.mxu1 %v638_v0  ;;  %p610_p13 = por %p609_p12, %p608_p11 }
  0x57   :  { %463 = vmatpush1.bf16.msra.mxu0 %v462_v59  ;;  %v66_v59 = vld [vmem:[#allocation2 + $0x20] sm:$0xff] }
  0x58   :  { %465 = vmatprep.subr.bf16.mxu0 %v464_v60  ;;  %v238_v60 = vld [vmem:[#allocation7 + $0x70] sm:$0xff]  ;;  %p611_p0 = pnand %p610_p13, %p604_p10 }
  0x59   :  { %513 = vmatpush3.bf16.msra.mxu1 %v512_v29  ;;  %v518_v62 = vpack.c.bf16 %v239_v61, %v238_v60 }
  0x5a   :  { %514 = vmatprep.subr.bf16.mxu1 %v638_v0 }
  0x5b   :  { %467 = vmatpush1.bf16.msra.mxu0 %v466_v5 }
  0x5c   :  { %469 = vmatprep.subr.bf16.mxu0 %v468_v6 }
  0x5d   :  { %516 = vmatpush3.bf16.msra.mxu1 %v515_v38 }
  0x5e   :  { %517 = vmatprep.subr.bf16.mxu1 %v638_v0  ;;  %v65_v0 = vld [vmem:[#allocation2 + $0x18] sm:$0xff] }
  0x5f   :  { %471 = vmatpush1.bf16.msra.mxu0 %v470_v14 }
  0x60   :  { %473 = vmatprep.subr.bf16.mxu0 %v472_v15 }
  0x61   :  { %519 = vmatpush3.bf16.msra.mxu1 %v518_v62 }
  0x63   :  { %475 = vmatpush1.bf16.msra.mxu0 %v474_v23 }
  0x64   :  { %477 = vmatprep.subr.bf16.mxu0 %v476_v24 }
  0x67   :  { %479 = vmatpush1.bf16.msra.mxu0 %v478_v32 }
  0x68   :  { %481 = vmatprep.subr.bf16.mxu0 %v480_v33 }
  0x6b   :  { %483 = vmatpush1.bf16.msra.mxu0 %v482_v39 }
  0x6c   :  { %485 = vmatprep.subr.bf16.mxu0 %v484_v40 }
  0x6f   :  { %487 = vmatpush1.bf16.msra.mxu0 %v486_v45 }
  0x70   :  { %489 = vmatprep.subr.bf16.mxu0 %v488_v46 }
  0x73   :  { %491 = vmatpush1.bf16.msra.mxu0 %v490_v51 }
  0x74   :  { %493 = vmatprep.subr.bf16.mxu0 %v492_v52 }
  0x77   :  { %495 = vmatpush1.bf16.msra.mxu0 %v494_v55 }
  0x7a   :  { %197 = vmatmul.mubr.f32.vlgmr.msra.gmra.mrb[0].mxu0 %v62_v56 }
  0x7b   :  { %202 = vmatprep.mubr.f32.mxu0 %v65_v0 }
  0x7e   :  { %203 = vmatmul.mubr.f32.gmra.mrb[2].mxu0 %v64_v57 }
  0x7f   :  { %208 = vmatprep.mubr.f32.mxu0 %v67_v58 }
  0x82   :  { %209 = vmatmul.mubr.f32.gmra.mrb[4].mxu0 %v66_v59 }
 0x14d   :  { %v198_v1 = vpop.f32.mrb[0].mxu0 }
 0x14e   :  { %v215_v2 = vmul.f32 %v198_v1, %v198_v1  ;;  %v200_v3 = vpop.f32.mrb[1].mxu0 }
 0x14f   :  { %v218_v4 = vmul.f32 %v200_v3, %v200_v3 }
 0x151   :  { %v221_v5 = vadd.f32 %v218_v4, %v215_v2  ;;  %v204_v6 = vpop.f32.mrb[2].mxu0 }
 0x152   :  { %v216_v7 = vmul.f32 %v204_v6, %v204_v6  ;;  %v206_v8 = vpop.f32.mrb[3].mxu0 }
 0x153   :  { %v219_v9 = vmul.f32 %v206_v8, %v206_v8  ;;  %424 = vmatmul.mubr.f32.vlgmr.msra.gmra.mrb[0].mxu1 %v221_v5 }
 0x154   :  { %426 = vmatprep.mubr.msk.f32.mxu1 %vm639_vm0, %v640_v63 }
 0x155   :  { %v222_v10 = vadd.f32 %v219_v9, %v216_v7  ;;  %v210_v11 = vpop.f32.mrb[4].mxu0 }
 0x156   :  { %v217_v12 = vmul.f32 %v210_v11, %v210_v11  ;;  %v212_v13 = vpop.f32.mrb[5].mxu0 }
 0x157   :  { %v220_v14 = vmul.f32 %v212_v13, %v212_v13  ;;  %427 = vmatmul.mubr.f32.gmra.mrb[2].mxu1 %v222_v10 }
 0x158   :  { %429 = vmatprep.mubr.msk.f32.mxu1 %vm639_vm0, %v640_v63 }
 0x159   :  { %v223_v15 = vadd.f32 %v220_v14, %v217_v12 }
 0x15b   :  { %430 = vmatmul.mubr.f32.gmra.mrb[4].mxu1 %v223_v15 }
 0x226   :  { %v306_v16 = vpop.f32.mrb[0].mxu1 }
 0x227   :  { %v320_v17 = vmax.f32 %v306_v16, 1e-10  ;;  %v425_v18 = vpop.f32.mrb[1].mxu1 }
 0x229   :  { %531 = vlog2.f32 %v320_v17 }
 0x22a   :  { %v311_v19 = vpop.f32.mrb[2].mxu1 }
 0x22b   :  { %v321_v20 = vmax.f32 %v311_v19, 1e-10  ;;  %v428_v21 = vpop.f32.mrb[3].mxu1 }
 0x22d   :  { %533 = vlog2.f32 %v321_v20 }
 0x22e   :  { %v316_v22 = vpop.f32.mrb[4].mxu1 }
 0x22f   :  { %v322_v23 = vmax.f32 %v316_v22, 1e-10  ;;  %v431_v24 = vpop.f32.mrb[5].mxu1 }
 0x231   :  { %535 = vlog2.f32 %v322_v23 }
 0x233   :  { %v532_v25 = vpop.eup %531 }
 0x234   :  { %v324_v27 = vmul.f32 0.6931472, %v532_v25 }
 0x236   :  { %v336_v29 = vmul.f32 %v370_v26, %v324_v27 }
 0x237   :  { %v534_v30 = vpop.eup %533 }
 0x238   :  { %v326_v31 = vmul.f32 0.6931472, %v534_v30  ;;  %v346_v32 = vadd.f32 %v371_v28, %v336_v29 }
 0x23a   :  { %v337_v33 = vmul.f32 %v370_v26, %v326_v31  ;;  %349 = vst [vmem:[#allocation8] sm:$0xff] %v346_v32 }
 0x23b   :  { %v536_v34 = vpop.eup %535 }
 0x23c   :  { %v328_v35 = vmul.f32 0.6931472, %v536_v34  ;;  %v347_v36 = vadd.f32 %v371_v28, %v337_v33 }
 0x23e   :  { %v338_v37 = vmul.f32 %v370_v26, %v328_v35  ;;  %350 = vst [vmem:[#allocation8 + $0x8] sm:$0xff] %v347_v36 }
 0x240   :  { %v348_v38 = vadd.f32 %v371_v28, %v338_v37 }
 0x242   :  { %351 = vst [vmem:[#allocation8 + $0x10] sm:$0xff] %v348_v38 }
 0x243   :  { %614 = shalt.err (!%p611_p0)
}
 0x244   :  { %s615_s12 = scalar_lea.hbm %s755_s5, 384 }
 0x245   :  { %p616_p1 = scmp.ne.s32.totalorder %s755_s5, %s615_s12  ;;  %p619_p2 = scmp.lt.u32.totalorder %s615_s12, %s755_s5 }
 0x247   :  { %p621_p3 = pnand %p619_p2, %p616_p1 }
 0x249   :  { %624 = shalt.err (!%p621_p3)
}
 0x24a   :  { %363 = dma.vmem_to_hbm [thread:$0]  %s358_s10, 384, %s755_s5, [#allocation4], %s636_s0, %s636_s0, %s637_s21  }
 0x24b   :  { %629 = dma.done.wait [#allocation4], 384  }
 0x24c   :  { %630 = vsyncadd [#allocation4], 4294966912 }
 0x24d   :  { %367 = vsyncpa [#allocation3], 1 }
 0x24e   :  { %368 = vsyncpa [#allocation6], 1 }
 0x24f   :  { %369 = vsyncpa [#allocation4], 1 }

</bundles_post_ra>
